<compile_context>
chip_gen: v6e
topology: v6e:2x2x1
jax: 0.10.0
libtpu: 0.0.40
codegen_flags: <defaults>
</compile_context>

<pallas_src>
import jax
import jax.numpy as jnp
from jax.experimental import pallas as pl
from jax.experimental.pallas import tpu as pltpu

_LANES = 128
_SUB_ROWS = 512  # rows per fused inner reduction step (multiple of 32)


def _pick_block_rows():
    """Generation-aware default rows-per-block (multiple of 512)."""
    try:
        kind = jax.devices()[0].device_kind.lower()
    except Exception:
        return 4096
    if "v6" in kind:                                   # v6e: 128 MiB VMEM, go big
        return 8192
    if "v5" in kind and ("lite" in kind or "v5e" in kind):
        return 2048                                    # v5e: 16 MiB scoped default
    return 4096                                        # v7x / v4 / v5p / unknown


# ---------------------------------------------------------------------------
# Path A: M % 128 == 0  →  (N, R, 128) layout, contiguous (1, tile_r, 128) blocks.
# ---------------------------------------------------------------------------
def _make_dice3d_kernel(tile_r, rows_total, need_mask):
    sub_r = _SUB_ROWS if tile_r >= _SUB_ROWS else tile_r
    n_sub = tile_r // sub_r
    rem = tile_r - n_sub * sub_r   # only nonzero in the single-chunk (no-mask) case

    def kernel(pred_ref, targ_ref, inter_ref, denom_ref):
        j = pl.program_id(1)

        @pl.when(j == 0)
        def _():
            inter_ref[...] = jnp.zeros_like(inter_ref)
            denom_ref[...] = jnp.zeros_like(denom_ref)

        base_row = j * tile_r

        def partial(off, rows):
            # Single fused pass over a (rows, 128) sub-slice: load, (mask), mul/add,
            # sublane-reduce into (1, 128) lane-dense partials. No full-block temps.
            p = pred_ref[0, pl.ds(off, rows), :].astype(jnp.float32)
            t = targ_ref[0, pl.ds(off, rows), :].astype(jnp.float32)
            if need_mask:
                row = base_row + off + jax.lax.broadcasted_iota(
                    jnp.int32, (rows, _LANES), 0)
                keep = row < rows_total
                p = jnp.where(keep, p, 0.0)
                t = jnp.where(keep, t, 0.0)
            return (jnp.sum(p * t, axis=0, keepdims=True),
                    jnp.sum(p + t, axis=0, keepdims=True))

        def body(k, carry):
            acc_i, acc_d = carry
            off = pl.multiple_of(k * sub_r, sub_r)
            pi, pd = partial(off, sub_r)
            return acc_i + pi, acc_d + pd

        acc0 = (jnp.zeros((1, _LANES), jnp.float32),
                jnp.zeros((1, _LANES), jnp.float32))
        acc_i, acc_d = jax.lax.fori_loop(0, n_sub, body, acc0, unroll=True)

        if rem:  # static remainder (< sub_r rows), single-chunk case only
            pi, pd = partial(n_sub * sub_r, rem)
            acc_i = acc_i + pi
            acc_d = acc_d + pd

        inter_ref[...] += acc_i[None]
        denom_ref[...] += acc_d[None]

    return kernel


def _dice_sums_3d(m1, m2, block_rows):
    n, m = m1.shape
    r = m // _LANES
    x1 = m1.reshape(n, r, _LANES)
    x2 = m2.reshape(n, r, _LANES)

    if r <= block_rows:
        # One block covers the whole sample; block dim == array dim, no mask needed.
        tile_r, num_chunks, need_mask = r, 1, False
    else:
        tile_r = block_rows                       # multiple of 512 (covers packing)
        num_chunks = pl.cdiv(r, tile_r)
        need_mask = (r % tile_r) != 0             # ragged last chunk masked in-kernel

    kernel = _make_dice3d_kernel(tile_r, r, need_mask)

    in_spec = pl.BlockSpec((1, tile_r, _LANES), lambda b, j: (b, j, 0))
    out_spec = pl.BlockSpec((1, 1, _LANES), lambda b, j: (b, 0, 0))

    in_step_bytes = tile_r * _LANES * (x1.dtype.itemsize + x2.dtype.itemsize)
    vmem_limit = int(min(48 * 2**20, 2 * in_step_bytes + 16 * 2**20))
    cost = pl.CostEstimate(
        flops=3 * n * m, transcendentals=0,
        bytes_accessed=int(n * m * (x1.dtype.itemsize + x2.dtype.itemsize)))

    inter_p, denom_p = pl.pallas_call(
        kernel,
        out_shape=(jax.ShapeDtypeStruct((n, 1, _LANES), jnp.float32),
                   jax.ShapeDtypeStruct((n, 1, _LANES), jnp.float32)),
        grid_spec=pltpu.PrefetchScalarGridSpec(
            num_scalar_prefetch=0,
            grid=(n, num_chunks),
            in_specs=[in_spec, in_spec],
            out_specs=[out_spec, out_spec],
        ),
        compiler_params=pltpu.CompilerParams(
            dimension_semantics=("parallel", "arbitrary"),
            vmem_limit_bytes=vmem_limit,
        ),
        cost_estimate=cost,
    )(x1, x2)

    return jnp.sum(inter_p, axis=(1, 2)), jnp.sum(denom_p, axis=(1, 2))


# ---------------------------------------------------------------------------
# Path B: ragged M (M % 128 != 0) → stream the raw (N, M) array, lane-mask the tail
# in-kernel. Zero padding, zero extra HBM copies.
# ---------------------------------------------------------------------------
def _make_dice2d_kernel(cols, total_cols, need_mask):
    def kernel(pred_ref, targ_ref, inter_ref, denom_ref):
        j = pl.program_id(0)

        @pl.when(j == 0)
        def _():
            inter_ref[...] = jnp.zeros_like(inter_ref)
            denom_ref[...] = jnp.zeros_like(denom_ref)

        p = pred_ref[...].astype(jnp.float32)     # (n, cols)
        t = targ_ref[...].astype(jnp.float32)
        if need_mask:
            col = j * cols + jax.lax.broadcasted_iota(jnp.int32, p.shape, 1)
            keep = col < total_cols
            p = jnp.where(keep, p, 0.0)
            t = jnp.where(keep, t, 0.0)
        inter_ref[...] += jnp.sum(p * t, axis=1, keepdims=True)
        denom_ref[...] += jnp.sum(p + t, axis=1, keepdims=True)

    return kernel


def _dice_sums_2d(m1, m2):
    n, m = m1.shape
    if m <= _LANES:
        cols = m                                   # block dim == full dim
    else:
        lane_tiles = m // _LANES
        cap_tiles = max(1, (256 * 1024) // (n * _LANES))   # ~1 MiB f32 per input block
        cols = _LANES * min(lane_tiles, cap_tiles)
    num_chunks = pl.cdiv(m, cols)
    need_mask = (m % cols) != 0

    kernel = _make_dice2d_kernel(cols, m, need_mask)

    cost = pl.CostEstimate(
        flops=3 * n * m, transcendentals=0,
        bytes_accessed=int(n * m * (m1.dtype.itemsize + m2.dtype.itemsize)))

    inter_p, denom_p = pl.pallas_call(
        kernel,
        out_shape=(jax.ShapeDtypeStruct((n, 1), jnp.float32),
                   jax.ShapeDtypeStruct((n, 1), jnp.float32)),
        grid_spec=pltpu.PrefetchScalarGridSpec(
            num_scalar_prefetch=0,
            grid=(num_chunks,),
            in_specs=[pl.BlockSpec((n, cols), lambda j: (0, j)),
                      pl.BlockSpec((n, cols), lambda j: (0, j))],
            out_specs=[pl.BlockSpec((n, 1), lambda j: (0, 0)),
                       pl.BlockSpec((n, 1), lambda j: (0, 0))],
        ),
        compiler_params=pltpu.CompilerParams(
            dimension_semantics=("arbitrary",),
        ),
        cost_estimate=cost,
    )(m1, m2)

    return inter_p[:, 0], denom_p[:, 0]


# ---------------------------------------------------------------------------
# Public entry point (matches DiceLoss.forward).
# ---------------------------------------------------------------------------
def dice_loss(pred, target, *, block_rows=None):
    assert pred.shape == target.shape
    n = pred.shape[0]
    m1 = pred.reshape(n, -1)      # torch .view(num, -1)
    m2 = target.reshape(n, -1)
    m = m1.shape[1]

    if block_rows is None:
        block_rows = _pick_block_rows()
    block_rows = max(512, (block_rows // 512) * 512)

    if m % _LANES == 0:
        inter, denom = _dice_sums_3d(m1, m2, block_rows)
    else:
        inter, denom = _dice_sums_2d(m1, m2)

    smooth = 0.0
    score = (2.0 * inter + smooth) / (denom + smooth)
    return 1.0 - jnp.sum(score) / n


def dice_loss_ref(pred, target):
    n = pred.shape[0]
    m1 = pred.reshape(n, -1).astype(jnp.float32)
    m2 = target.reshape(n, -1).astype(jnp.float32)
    inter = jnp.sum(m1 * m2, axis=1)
    return 1.0 - jnp.sum((2.0 * inter) / (jnp.sum(m1, axis=1) + jnp.sum(m2, axis=1))) / n


if __name__ == "__main__":
    key = jax.random.PRNGKey(0)
    k1, k2, k3, k4, k5, k6 = jax.random.split(key, 6)

    # 1) NCHW inputs as the PyTorch module would see (sigmoid probs + binary mask);
    #    M = 4*16*16 = 1024 -> contiguous (N, R, 128) path, no padding, no masking.
    pred = jax.nn.sigmoid(jax.random.normal(k1, (2, 4, 16, 16), dtype=jnp.float32))
    target = (jax.random.uniform(k2, (2, 4, 16, 16)) > 0.5).astype(jnp.float32)
    out = jax.block_until_ready(dice_loss(pred, target))
    ref = jax.block_until_ready(dice_loss_ref(pred, target))
    assert jnp.allclose(out, ref, atol=1e-5, rtol=1e-4), (out, ref)

    # 2) Ragged feature dim (M = 189, not a multiple of 128): in-kernel lane-masked
    #    path, zero padding copies.
    pred2 = jax.nn.sigmoid(jax.random.normal(k3, (2, 3, 7, 9), dtype=jnp.float32))
    target2 = (jax.random.uniform(k4, (2, 3, 7, 9)) > 0.5).astype(jnp.float32)
    out2 = jax.block_until_ready(dice_loss(pred2, target2))
    ref2 = jax.block_until_ready(dice_loss_ref(pred2, target2))
    assert jnp.allclose(out2, ref2, atol=1e-5, rtol=1e-4), (out2, ref2)

    # 3) Multi-chunk reduction with a ragged last chunk along the row axis
    #    (R = 1300, block_rows forced to 512 -> 3 chunks, last one row-masked in-kernel).
    pred3 = jax.nn.sigmoid(jax.random.normal(k5, (2, 1300, 128), dtype=jnp.float32))
    target3 = (jax.random.uniform(k6, (2, 1300, 128)) > 0.5).astype(jnp.float32)
    out3 = jax.block_until_ready(dice_loss(pred3, target3, block_rows=512))
    ref3 = jax.block_until_ready(dice_loss_ref(pred3, target3))
    assert jnp.allclose(out3, ref3, atol=1e-5, rtol=1e-4), (out3, ref3)

    print("KERNEL_OK")
</pallas_src>

<mosaic_0001>
module attributes {stable_mosaic.version = 11 : i64} {
  func.func @kernel(%arg0: i32, %arg1: i32, %arg2: memref<1x8x128xf32, #tpu.memory_space<vmem>>, %arg3: memref<1x8x128xf32, #tpu.memory_space<vmem>>, %arg4: memref<1x1x128xf32, #tpu.memory_space<vmem>>, %arg5: memref<1x1x128xf32, #tpu.memory_space<vmem>>) attributes {dimension_semantics = [#tpu.dimension_semantics<parallel>, #tpu.dimension_semantics<arbitrary>], iteration_bounds = array<i64: 2, 1>, scalar_prefetch = 0 : i64, scratch_operands = 0 : i64, tpu.core_type = #tpu.core_type<tc>, window_params = [{transform_indices = @transform_0, window_bounds = array<i64: 1, 8, 128>}, {transform_indices = @transform_1, window_bounds = array<i64: 1, 8, 128>}, {transform_indices = @transform_2, window_bounds = array<i64: 1, 1, 128>}, {transform_indices = @transform_3, window_bounds = array<i64: 1, 1, 128>}]} {
    %c0_i32 = arith.constant 0 : i32
    %0 = arith.cmpi eq, %arg1, %c0_i32 : i32
    %1 = arith.extui %0 : i1 to i32
    %c0_i32_0 = arith.constant 0 : i32
    %2 = arith.cmpi ne, %1, %c0_i32_0 : i32
    scf.if %2 {
      %cst_20 = arith.constant 0.000000e+00 : f32
      %29 = vector.broadcast %cst_20 : f32 to vector<1x1x128xf32>
      %c0_21 = arith.constant 0 : index
      %c0_22 = arith.constant 0 : index
      %c0_23 = arith.constant 0 : index
      %30 = vector.load %arg4[%c0_21, %c0_22, %c0_23] : memref<1x1x128xf32, #tpu.memory_space<vmem>>, vector<1x1x128xf32>
      tpu.vector_store %arg4[%c0_21, %c0_22, %c0_23], %29 {strides = array<i32>} : memref<1x1x128xf32, #tpu.memory_space<vmem>>, vector<1x1x128xf32>,
      %cst_24 = arith.constant 0.000000e+00 : f32
      %31 = vector.broadcast %cst_24 : f32 to vector<1x1x128xf32>
      %c0_25 = arith.constant 0 : index
      %c0_26 = arith.constant 0 : index
      %c0_27 = arith.constant 0 : index
      %32 = vector.load %arg5[%c0_25, %c0_26, %c0_27] : memref<1x1x128xf32, #tpu.memory_space<vmem>>, vector<1x1x128xf32>
      tpu.vector_store %arg5[%c0_25, %c0_26, %c0_27], %31 {strides = array<i32>} : memref<1x1x128xf32, #tpu.memory_space<vmem>>, vector<1x1x128xf32>,
    } else {
    }
    %cst = arith.constant 0.000000e+00 : f32
    %3 = vector.broadcast %cst : f32 to vector<1x128xf32>
    %cst_1 = arith.constant 0.000000e+00 : f32
    %4 = vector.broadcast %cst_1 : f32 to vector<1x128xf32>
    %c0_i32_2 = arith.constant 0 : i32
    %c8_i32 = arith.constant 8 : i32
    %5 = arith.muli %c0_i32_2, %c8_i32 : i32
    %6 = tpu.assume_multiple %5, 8 : i32
    %c0 = arith.constant 0 : index
    %7 = arith.index_cast %6 : i32 to index
    %c0_3 = arith.constant 0 : index
    %8 = vector.load %arg2[%c0, %7, %c0_3] : memref<1x8x128xf32, #tpu.memory_space<vmem>>, vector<1x8x128xf32>
    %9 = vector.shape_cast %8 : vector<1x8x128xf32> to vector<8x128xf32>
    %c0_4 = arith.constant 0 : index
    %10 = arith.index_cast %6 : i32 to index
    %c0_5 = arith.constant 0 : index
    %11 = vector.load %arg3[%c0_4, %10, %c0_5] : memref<1x8x128xf32, #tpu.memory_space<vmem>>, vector<1x8x128xf32>
    %12 = vector.shape_cast %11 : vector<1x8x128xf32> to vector<8x128xf32>
    %13 = arith.mulf %9, %12 : vector<8x128xf32>
    %cst_6 = arith.constant dense<0.000000e+00> : vector<128xf32>
    %14 = vector.multi_reduction <add>, %13, %cst_6 [0] : vector<8x128xf32> to vector<128xf32>
    %15 = vector.shape_cast %14 : vector<128xf32> to vector<1x128xf32>
    %16 = arith.addf %9, %12 : vector<8x128xf32>
    %cst_7 = arith.constant dense<0.000000e+00> : vector<128xf32>
    %17 = vector.multi_reduction <add>, %16, %cst_7 [0] : vector<8x128xf32> to vector<128xf32>
    %18 = vector.shape_cast %17 : vector<128xf32> to vector<1x128xf32>
    %19 = arith.addf %3, %15 : vector<1x128xf32>
    %20 = arith.addf %4, %18 : vector<1x128xf32>
    %c1_i32 = arith.constant 1 : i32
    %c0_8 = arith.constant 0 : index
    %c0_9 = arith.constant 0 : index
    %c0_10 = arith.constant 0 : index
    %21 = vector.load %arg4[%c0_8, %c0_9, %c0_10] : memref<1x1x128xf32, #tpu.memory_space<vmem>>, vector<1x1x128xf32>
    %22 = vector.shape_cast %19 : vector<1x128xf32> to vector<1x1x128xf32>
    %23 = arith.addf %21, %22 : vector<1x1x128xf32>
    %c0_11 = arith.constant 0 : index
    %c0_12 = arith.constant 0 : index
    %c0_13 = arith.constant 0 : index
    %24 = vector.load %arg4[%c0_11, %c0_12, %c0_13] : memref<1x1x128xf32, #tpu.memory_space<vmem>>, vector<1x1x128xf32>
    tpu.vector_store %arg4[%c0_11, %c0_12, %c0_13], %23 {strides = array<i32>} : memref<1x1x128xf32, #tpu.memory_space<vmem>>, vector<1x1x128xf32>,
    %c0_14 = arith.constant 0 : index
    %c0_15 = arith.constant 0 : index
    %c0_16 = arith.constant 0 : index
    %25 = vector.load %arg5[%c0_14, %c0_15, %c0_16] : memref<1x1x128xf32, #tpu.memory_space<vmem>>, vector<1x1x128xf32>
    %26 = vector.shape_cast %20 : vector<1x128xf32> to vector<1x1x128xf32>
    %27 = arith.addf %25, %26 : vector<1x1x128xf32>
    %c0_17 = arith.constant 0 : index
    %c0_18 = arith.constant 0 : index
    %c0_19 = arith.constant 0 : index
    %28 = vector.load %arg5[%c0_17, %c0_18, %c0_19] : memref<1x1x128xf32, #tpu.memory_space<vmem>>, vector<1x1x128xf32>
    tpu.vector_store %arg5[%c0_17, %c0_18, %c0_19], %27 {strides = array<i32>} : memref<1x1x128xf32, #tpu.memory_space<vmem>>, vector<1x1x128xf32>,
    return
  }
  func.func @transform_0(%arg0: i32, %arg1: i32) -> (i32, i32, i32) {
    %c0_i32 = arith.constant 0 : i32
    %c0_i32_0 = arith.constant 0 : i32
    return %arg0, %arg1, %c0_i32 : i32, i32, i32
  }
  func.func @transform_1(%arg0: i32, %arg1: i32) -> (i32, i32, i32) {
    %c0_i32 = arith.constant 0 : i32
    %c0_i32_0 = arith.constant 0 : i32
    return %arg0, %arg1, %c0_i32 : i32, i32, i32
  }
  func.func @transform_2(%arg0: i32, %arg1: i32) -> (i32, i32, i32) {
    %c0_i32 = arith.constant 0 : i32
    %c0_i32_0 = arith.constant 0 : i32
    %c0_i32_1 = arith.constant 0 : i32
    return %arg0, %c0_i32, %c0_i32_0 : i32, i32, i32
  }
  func.func @transform_3(%arg0: i32, %arg1: i32) -> (i32, i32, i32) {
    %c0_i32 = arith.constant 0 : i32
    %c0_i32_0 = arith.constant 0 : i32
    %c0_i32_1 = arith.constant 0 : i32
    return %arg0, %c0_i32, %c0_i32_0 : i32, i32, i32
  }
}

</mosaic_0001>

<bundles_post_ra>
// kernel: tpu_custom_call.1
= control target key start
LH: loop header
LB: loop body
LE: loop exit
PB: predicated region body
PF: predicated region fallthrough
CT: control target
= control target key end

     0   :  { %9 = vsyncpa [#allocation3], 0  ;;  %s937_s0 = inlined_call_operand.hbm [shape: f32[2,8,128], index: 0, kind: input, shape index: {}]   ;;  %s938_s1 = inlined_call_operand.hbm [shape: f32[2,8,128], index: 1, kind: input, shape index: {}]   ;;  %s939_s2 = inlined_call_operand.hbm [shape: f32[2,1,128], index: 2, kind: output, shape index: {0}]   ;;  %s940_s3 = inlined_call_operand.hbm [shape: f32[2,1,128], index: 3, kind: output, shape index: {1}]  }
   0x1   :  { %11 = vsyncpa [#allocation3 + $0x1], 0 }
   0x2   :  { %12 = vsyncpa [#allocation6], 0 }
   0x3   :  { %14 = vsyncpa [#allocation6 + $0x1], 0 }
   0x4   :  { %15 = vsyncpa [#allocation4], 0 }
   0x5   :  { %17 = vsyncpa [#allocation4 + $0x1], 0 }
   0x6   :  { %18 = vsyncpa [#allocation9], 0 }
   0x7   :  { %20 = vsyncpa [#allocation9 + $0x1], 0  ;;  %s722_s12 = smov 0   ;;  %s724_s13 = smov 0  }
   0x8   :  { %s726_s14 = smov 0   ;;  %s728_s15 = smov 0  }
   0x9   :  { %s730_s16 = smov 0   ;;  %s732_s17 = smov 0  }
   0xa LB: > { %s437_s18 = sadd.s32 4294967295, %s695_s17   ;;  %s438_s19 = sadd.s32 4294967294, %s695_s17   ;;  %s695_s17 = sphi %s732_s17, %s26_s17   ;;  %s691_s16 = sphi %s730_s16, %s952_s16   ;;  %s687_s15 = sphi %s728_s15, %s951_s15   ;;  %s683_s14 = sphi %s726_s14, %s950_s14   ;;  %s679_s13 = sphi %s724_s13, %s949_s13   ;;  %s675_s12 = sphi %s722_s12, %s948_s12  }
   0xb   : > { %s38_s20 = sadd.s32 1, %s691_s16  ;;  %s47_s21 = sadd.s32 1, %s683_s14 }
   0xc   : > { %p40_p0 = scmp.ge.s32.totalorder %s38_s20, 2  ;;  %p54_p1 = scmp.ne.s32.totalorder %s683_s14, %s679_s13 }
   0xd   : > { %p55_p2 = scmp.eq.s32.totalorder %s695_s17, 0  ;;  %p60_p3 = scmp.ne.s32.totalorder %s679_s13, %s675_s12 }
   0xe   : > { %s954_s20 = smov (%p40_p0, %s38_s20), 0  ;;  %p61_p5 = scmp.eq.s32.totalorder %s437_s18, 0 }
   0xf   : > { %p763_p4 = por %p55_p2, %p54_p1  ;;  %s42_s23 = ssub.s32 %s691_s16, %s954_s20 }
  0x10   : > { %p112_p6 = scmp.eq.s32.totalorder %s437_s18, 1  ;;  %p45_p7 = scmp.eq.s32.totalorder %s42_s23, 0 }
  0x11   : > { %p769_p8 = por %p61_p5, %p60_p3  ;;  %p118_p10 = scmp.eq.s32.totalorder %s438_s19, 1 }
  0x12   : > { %p773_p9 = por %p112_p6, %p54_p1  ;;  %p474_p13 = scmp.lt.s32.totalorder %s695_s17, 2 }
  0x13   : > { %s778_s26 = scalar_select %p45_p7, %s683_s14, %s47_s21  }
  0x14   : > { %p780_p11 = por %p118_p10, %p60_p3  ;;  %s787_s28 = sand.u32 1, %s683_s14  }
  0x15   : > { %s441_s29 = sshll.u32 %s787_s28, 3  ;;  %s442_s30 = sshll.u32 %s691_s16, 7 }
  0x16   : > { %s174_s6 = scalar_lea.hbm %s937_s0, %s442_s30  ;;  %s168_s7 = scalar_lea.vmem [#allocation2], %s441_s29 }
  0x17   : > { %s176_s8 = sshll.u32 %s168_s7, 4  ;;  %p796_p0 = pnand %p474_p13, %p763_p4  ;;  %s177_s8 = int_to_ptr.vmem [resolvable:$true] %s176_s8 }
  0x18   : > { %p445_p1 = scmp.ge.s32.totalorder %s695_s17, 1  ;;  %p200_p2 = scmp.lt.s32.totalorder %s695_s17, 3 }
  0x19   : > { %s165_s10 = scalar_lea.sflag [#allocation3], %s787_s28  ;;  %p527_p3 = pneg %p796_p0 }
  0x1a   : > { %s538_s11 = scalar_lea.vmem %s177_s8, 128  ;;  %s697_s18 = smov [#allocation2]  }
  0x1b   : > { %p539_p5 = scmp.ne.s32.totalorder %s177_s8, %s538_s11  ;;  %s543_s19 = sshll.u32 %s697_s18, 4  ;;  %s544_s19 = int_to_ptr.vmem [resolvable:$false] %s543_s19 }
  0x1c   : > { %s545_s21 = scalar_lea.vmem %s544_s19, 256  ;;  %p546_p4 = scmp.lt.s32.totalorder %s177_s8, %s544_s19 }
  0x1d   : > { %p541_p6 = pnand %p539_p5, %p527_p3  ;;  %p547_p10 = scmp.lt.s32.totalorder %s545_s21, %s538_s11 }
  0x1f   : > { %p542_p7 = pneg %p541_p6  ;;  %p548_p13 = por %p547_p10, %p546_p4 }
  0x21   : > { %p549_p12 = pnand %p548_p13, %p542_p7 }
  0x23   : > { %552 = shalt.err (!%p549_p12)
}
  0x24   : > { %463 = dma.hbm_to_vmem [thread:$0]  (!%p796_p0), %s174_s6, 128, %s177_s8, %s165_s10  }
  0x25   : > { %p814_p5 = pnand %p445_p1, %p200_p2  ;;  %s193_s5 = scalar_lea.hbm %s938_s1, %s442_s30 }
  0x26   : > { %s187_s7 = scalar_lea.vmem [#allocation5], %s441_s29  ;;  %s184_s18 = scalar_lea.sflag [#allocation6], %s787_s28 }
  0x27   : > { %s195_s11 = sshll.u32 %s187_s7, 4  ;;  %s698_s6 = smov [#allocation5]   ;;  %s196_s11 = int_to_ptr.vmem [resolvable:$true] %s195_s11 }
  0x28   : > { %s566_s19 = scalar_lea.vmem %s196_s11, 128  ;;  %s571_s8 = sshll.u32 %s698_s6, 4  ;;  %s572_s8 = int_to_ptr.vmem [resolvable:$false] %s571_s8 }
  0x29   : > { %p567_p12 = scmp.ne.s32.totalorder %s196_s11, %s566_s19  ;;  %s573_s10 = scalar_lea.vmem %s572_s8, 256 }
  0x2a   : > { %p574_p1 = scmp.lt.s32.totalorder %s196_s11, %s572_s8  ;;  %p575_p2 = scmp.lt.s32.totalorder %s573_s10, %s566_s19 }
  0x2b   : > { %p569_p6 = pnand %p567_p12, %p527_p3 }
  0x2c   : > { %p576_p4 = por %p575_p2, %p574_p1 }
  0x2d   : > { %p570_p7 = pneg %p569_p6 }
  0x2f   : > { %p577_p10 = pnand %p576_p4, %p570_p7 }
  0x31   : > { %580 = shalt.err (!%p577_p10)
}
  0x32   : > { %466 = dma.hbm_to_vmem [thread:$0]  (!%p796_p0), %s193_s5, 128, %s196_s11, %s184_s18  }
  0x33   : > { %204 = sbr.rel (%p814_p5) target bundleno = 111 (0x6f), region = 28  ;;  %s830_s28 = sand.u32 (!%p814_p5), 1, %s679_s13  }
  0x34   : > { %s446_s29 = sshll.u32 (!%p814_p5), %s830_s28, 3  ;;  %s207_s30 = scalar_lea.sflag (!%p814_p5), [#allocation3], %s830_s28 }
  0x35   : > { %s210_s21 = scalar_lea.vmem (!%p814_p5), [#allocation2], %s446_s29 }
  0x38   : > { %658 = dma.done.wait (%p769_p8), %s207_s30, 128  }
  0x39   : > { %660 = vsyncadd (%p769_p8), %s207_s30, 4294967168  ;;  %s216_s9 = scalar_lea.sflag [#allocation6], %s830_s28  ;;  %s219_s23 = scalar_lea.vmem [#allocation5], %s446_s29 }
  0x3a   : > { %662 = dma.done.wait (%p769_p8), %s216_s9, 128  }
  0x3b   : > { %664 = vsyncadd (%p769_p8), %s216_s9, 4294967168  ;;  %s844_s22 = scalar_lea.vmem [#allocation7], %s830_s28  ;;  %v699_v0 = vmov 0.0   ;;  %s848_s4 = scalar_lea.vmem [#allocation8], %s830_s28  ;;  %v256_v1 = vld [vmem:[%s210_s21] sm:$0xff]  ;;  %v257_v2 = vld [vmem:[%s219_s23] sm:$0xff] }
  0x3c   : > { %254 = vst [vmem:[%s844_s22] sm:$0x1] %v699_v0  ;;  %255 = vst [vmem:[%s848_s4] sm:$0x1] %v699_v0  ;;  %v258_v3 = vmul.f32 %v257_v2, %v256_v1  ;;  %v265_v4 = vadd.f32 %v257_v2, %v256_v1  ;;  %s448_s24 = sshll.u32 %s687_s15, 4  ;;  %s297_s5 = sshll.u32 %s844_s22, 4  ;;  %s861_s5 = int_to_ptr.vmem [resolvable:$true] %s297_s5 }
  0x3d   : > { %s310_s7 = sshll.u32 %s848_s4, 4  ;;  %s859_s19 = scalar_lea.hbm %s939_s2, %s448_s24  ;;  %s868_s7 = int_to_ptr.vmem [resolvable:$true] %s310_s7 }
  0x3e   : > { %v259_v5 = vrot.slane %v258_v3, 4  ;;  %v266_v6 = vrot.slane %v265_v4, 4  ;;  %s866_s15 = scalar_lea.hbm %s940_s3, %s448_s24  ;;  %s281_s10 = scalar_lea.sflag [#allocation4], %s830_s28 }
  0x3f   : > { %s581_s29 = scalar_lea.vmem %s861_s5, 16  ;;  %s700_s30 = smov [#allocation7]  }
  0x40   : > { %v260_v7 = vadd.f32 %v259_v5, %v258_v3  ;;  %v267_v8 = vadd.f32 %v266_v6, %v265_v4  ;;  %p582_p8 = scmp.ne.s32.totalorder %s861_s5, %s581_s29  ;;  %s585_s21 = sshll.u32 %s700_s30, 4  ;;  %s586_s21 = int_to_ptr.vmem [resolvable:$false] %s585_s21 }
  0x41   : > { %s587_s9 = scalar_lea.vmem %s586_s21, 32  ;;  %p588_p13 = scmp.lt.s32.totalorder %s861_s5, %s586_s21 }
  0x42   : > { %v261_v9 = vrot.slane %v260_v7, 2  ;;  %v268_v10 = vrot.slane %v267_v8, 2  ;;  %p583_p0 = pnand %p582_p8, %p773_p9  ;;  %p589_p5 = scmp.lt.s32.totalorder %s587_s9, %s581_s29 }
  0x43   : > { %v274_v15 = vld [vmem:[%s844_s22] sm:$0x1] }
  0x44   : > { %v262_v11 = vadd.f32 %v261_v9, %v260_v7  ;;  %v269_v12 = vadd.f32 %v268_v10, %v267_v8  ;;  %v277_v16 = vld [vmem:[%s848_s4] sm:$0x1]  ;;  %p584_p3 = pneg %p583_p0  ;;  %p590_p12 = por %p589_p5, %p588_p13 }
  0x46   : > { %v263_v13 = vrot.slane %v262_v11, 1  ;;  %v270_v14 = vrot.slane %v269_v12, 1  ;;  %p591_p6 = pnand %p590_p12, %p584_p3 }
  0x48   : > { %v264_v17 = vadd.f32 %v263_v13, %v262_v11  ;;  %v271_v18 = vadd.f32 %v270_v14, %v269_v12 }
  0x4a   : > { %v275_v19 = vadd.f32 %v274_v15, %v264_v17  ;;  %v278_v20 = vadd.f32 %v277_v16, %v271_v18 }
  0x4c   : > { %276 = vst [vmem:[%s844_s22] sm:$0x1] %v275_v19  ;;  %279 = vst [vmem:[%s848_s4] sm:$0x1] %v278_v20 }
  0x4d   : > { %594 = shalt.err (!%p591_p6)
}
  0x4e   : > { %s595_s23 = scalar_lea.hbm %s859_s19, 16  ;;  %s599_s24 = scalar_lea.hbm %s939_s2, 32 }
  0x4f   : > { %p596_p7 = scmp.ne.s32.totalorder %s859_s19, %s595_s23  ;;  %p600_p4 = scmp.lt.s32.totalorder %s859_s19, %s939_s2 }
  0x50   : > { %p601_p10 = scmp.lt.s32.totalorder %s599_s24, %s595_s23 }
  0x51   : > { %p597_p1 = pnand %p596_p7, %p773_p9 }
  0x52   : > { %p602_p8 = por %p601_p10, %p600_p4 }
  0x53   : > { %p598_p2 = pneg %p597_p1 }
  0x55   : > { %p603_p0 = pnand %p602_p8, %p598_p2 }
  0x57   : > { %606 = shalt.err (!%p603_p0)
}
  0x58   : > { %456 = dma.vmem_to_hbm [thread:$0]  (%p773_p9), %s861_s5, 16, %s859_s19, %s281_s10  }
  0x59   : > { %s285_s6 = scalar_lea.sflag [#allocation9], %s830_s28  ;;  %s607_s8 = scalar_lea.vmem %s868_s7, 16 }
  0x5a   : > { %p608_p3 = scmp.ne.s32.totalorder %s868_s7, %s607_s8  ;;  %s701_s29 = smov [#allocation8]  }
  0x5b   : > { %s611_s30 = sshll.u32 %s701_s29, 4  ;;  %s612_s30 = int_to_ptr.vmem [resolvable:$false] %s611_s30 }
  0x5c   : > { %p609_p13 = pnand %p608_p3, %p773_p9  ;;  %s613_s21 = scalar_lea.vmem %s612_s30, 32 }
  0x5d   : > { %p614_p12 = scmp.lt.s32.totalorder %s868_s7, %s612_s30  ;;  %p615_p6 = scmp.lt.s32.totalorder %s613_s21, %s607_s8 }
  0x5e   : > { %p610_p5 = pneg %p609_p13 }
  0x5f   : > { %p616_p7 = por %p615_p6, %p614_p12 }
  0x61   : > { %p617_p1 = pnand %p616_p7, %p610_p5 }
  0x63   : > { %620 = shalt.err (!%p617_p1)
}
  0x64   : > { %s621_s5 = scalar_lea.hbm %s866_s15, 16  ;;  %s625_s10 = scalar_lea.hbm %s940_s3, 32 }
  0x65   : > { %p622_p2 = scmp.ne.s32.totalorder %s866_s15, %s621_s5  ;;  %p626_p8 = scmp.lt.s32.totalorder %s866_s15, %s940_s3 }
  0x66   : > { %p627_p0 = scmp.lt.s32.totalorder %s625_s10, %s621_s5 }
  0x67   : > { %p623_p4 = pnand %p622_p2, %p773_p9 }
  0x68   : > { %p628_p3 = por %p627_p0, %p626_p8 }
  0x69   : > { %p624_p10 = pneg %p623_p4 }
  0x6b   : > { %p629_p13 = pnand %p628_p3, %p624_p10 }
  0x6d   : > { %632 = shalt.err (!%p629_p13)
}
  0x6e   : > { %457 = dma.vmem_to_hbm [thread:$0]  (%p773_p9), %s868_s7, 16, %s866_s15, %s285_s6  }
  0x6f PF: > { %s322_s22 = sand.u32 1, %s675_s12   ;;  %p947_p5 = scmp.ge.s32.totalorder %s695_s17, 2 }
  0x70   : > { %s323_s4 = scalar_lea.sflag [#allocation4], %s322_s22 }
  0x71   : > { %p468_p12 = pnand %p947_p5, %p780_p11 }
  0x73   : > { %p469_p6 = pneg %p468_p12 }
  0x75   : > { %666 = dma.done.wait (%p469_p6), %s323_s4, 16  }
  0x76   : > { %668 = vsyncadd (%p469_p6), %s323_s4, 4294967280  ;;  %s331_s24 = scalar_lea.sflag [#allocation9], %s322_s22 }
  0x77   : > { %670 = dma.done.wait (%p469_p6), %s331_s24, 16  }
  0x78   : > { %672 = vsyncadd (%p469_p6), %s331_s24, 4294967280  ;;  %s26_s17 = sadd.s32 1, %s695_s17   ;;  %s948_s12 = smov %s679_s13 }
  0x79   : > { %p23_p7 = scmp.ge.s32.totalorder %s26_s17, 4   ;;  %s949_s13 = smov %s683_s14 }
  0x7a   : > { %s950_s14 = smov %s778_s26  ;;  %s951_s15 = smov %s691_s16 }
  0x7b   : > { %s952_s16 = smov %s954_s20  ;;  %25 = sbr.rel (!%p23_p7) target bundleno = 10 (0xa), region = 107 }
  0x80   :  { %335 = vsyncpa [#allocation3], 1 }
  0x81   :  { %337 = vsyncpa [#allocation3 + $0x1], 1 }
  0x82   :  { %338 = vsyncpa [#allocation6], 1 }
  0x83   :  { %340 = vsyncpa [#allocation6 + $0x1], 1 }
  0x84   :  { %341 = vsyncpa [#allocation4], 1 }
  0x85   :  { %343 = vsyncpa [#allocation4 + $0x1], 1 }
  0x86   :  { %344 = vsyncpa [#allocation9], 1 }
  0x87   :  { %346 = vsyncpa [#allocation9 + $0x1], 1 }

</bundles_post_ra>
